<compile_context>
chip_gen: v7x
topology: tpu7x:2x2x1
jax: 0.10.0
libtpu: 0.0.40
codegen_flags: <defaults>
</compile_context>

<pallas_src>
import functools

import jax
import jax.numpy as jnp
from jax.experimental import pallas as pl
from jax.experimental.pallas import tpu as pltpu


def _random_linear_encoding_kernel(x_ref, matrix_ref, out_ref, *, alphabet_size):
    # x: (B, Lm) int32 token values; matrix: (Lm, C) f32 0/1 buffer.
    x = x_ref[...].astype(jnp.float32)                       # (B, Lm)
    mat = matrix_ref[...]                                     # (Lm, C)
    # Exact: all values are small non-negative integers (<< 2^24).
    y = jnp.dot(x, mat, preferred_element_type=jnp.float32)   # (B, C)

    a = jnp.float32(alphabet_size)
    inv_a = jnp.float32(1.0 / float(alphabet_size))
    # floor(y / a) computed as floor(y * (1/a) + 0.5/a): the +0.5/a nudge makes
    # the result exact for integer y despite 1/a being inexact in f32
    # (fractional parts of the true quotient are multiples of 1/a).
    q = jnp.floor(y * inv_a + jnp.float32(0.5) * inv_a)
    rem = y - q * a                                            # exact integer in [0, a)

    # NOTE: PyTorch returns int64 (.long()); int32 is the natural TPU integer
    # width and values are tiny, so semantics are preserved.
    out_ref[...] = rem.astype(jnp.int32)


def random_linear_encoding_forward(x_int, matrix, alphabet_size):
    """x_int: (B, message_length) int32, matrix: (message_length, code_length) f32."""
    B, _ = x_int.shape
    C = matrix.shape[1]
    kernel = functools.partial(_random_linear_encoding_kernel,
                               alphabet_size=alphabet_size)
    return pl.pallas_call(
        kernel,
        out_shape=jax.ShapeDtypeStruct((B, C), jnp.int32),
        in_specs=[pl.BlockSpec(memory_space=pltpu.MemorySpace.VMEM),
                  pl.BlockSpec(memory_space=pltpu.MemorySpace.VMEM)],
        out_specs=pl.BlockSpec(memory_space=pltpu.MemorySpace.VMEM),
    )(x_int, matrix)


def build_matrix(key, message_length, code_length):
    """Replicates the PyTorch buffer construction (requires message_length == 16)."""
    assert message_length == 16, "module hard-codes 16 via [[1]+[0]*15] rows"
    assert code_length >= 21, "needs code_length - 18 >= 3 for topk(3)"

    # Random sparse part: 3 ones per row in (message_length, code_length - 18).
    r = jax.random.uniform(key, (message_length, code_length - 18))
    _, idx = jax.lax.top_k(r, 3)                                   # (16, 3) distinct
    rand_part = jnp.sum(jax.nn.one_hot(idx, code_length - 18,
                                       dtype=jnp.float32), axis=1)  # (16, C-18)

    # Structured part: tridiagonal (16,16) framed by two unit rows, transposed.
    m = (jnp.eye(message_length, dtype=jnp.float32)
         + jnp.eye(message_length, k=1, dtype=jnp.float32)
         + jnp.eye(message_length, k=-1, dtype=jnp.float32))        # (16, 16)
    top = jnp.zeros((1, message_length), jnp.float32).at[0, 0].set(1.0)
    bot = jnp.zeros((1, message_length), jnp.float32).at[0, -1].set(1.0)
    m = jnp.concatenate([top, m, bot], axis=0).T                    # (16, 18)

    return jnp.concatenate([m, rand_part], axis=1)                  # (16, code_length)


if __name__ == "__main__":
    B = 4
    message_length = 16     # fixed by the module's construction
    code_length = 32
    alphabet_size = 2

    key = jax.random.PRNGKey(0)
    k_mat, k_x = jax.random.split(key)

    matrix = build_matrix(k_mat, message_length, code_length)       # (16, 32) f32
    x = jax.random.randint(k_x, (B, message_length), 0, alphabet_size,
                           dtype=jnp.int32)                          # (B, 16)

    out = random_linear_encoding_forward(x, matrix, alphabet_size)
    jax.block_until_ready(out)

    # Reference check against the plain-JAX forward.
    ref = jnp.mod(x.astype(jnp.float32) @ matrix,
                  jnp.float32(alphabet_size)).astype(jnp.int32)
    assert out.shape == (B, code_length)
    assert out.dtype == jnp.int32
    assert bool(jnp.all(out == ref))
    print("KERNEL_OK")
</pallas_src>

<mosaic_0001>
module attributes {stable_mosaic.version = 11 : i64} {
  func.func @_random_linear_encoding_kernel(%arg0: memref<4x16xi32, #tpu.memory_space<vmem>>, %arg1: memref<16x32xf32, #tpu.memory_space<vmem>>, %arg2: memref<4x32xi32, #tpu.memory_space<vmem>>) attributes {dimension_semantics = [], scalar_prefetch = 0 : i64, scratch_operands = 0 : i64, tpu.core_type = #tpu.core_type<tc>} {
    %c0 = arith.constant 0 : index
    %c0_0 = arith.constant 0 : index
    %0 = vector.load %arg0[%c0, %c0_0] : memref<4x16xi32, #tpu.memory_space<vmem>>, vector<4x16xi32>
    %1 = arith.sitofp %0 : vector<4x16xi32> to vector<4x16xf32>
    %c0_1 = arith.constant 0 : index
    %c0_2 = arith.constant 0 : index
    %2 = vector.load %arg1[%c0_1, %c0_2] : memref<16x32xf32, #tpu.memory_space<vmem>>, vector<16x32xf32>
    %cst = arith.constant dense<0.000000e+00> : vector<4x32xf32>
    %3 = tpu.matmul %1, %2, %cst {dimension_numbers = #tpu.dot_dimension_numbers<[1], [0], [0], [1], [0, 0, 1, 1], [], []>} : vector<4x16xf32>, vector<16x32xf32>, vector<4x32xf32> -> vector<4x32xf32>
    %cst_3 = arith.constant 5.000000e-01 : f32
    %4 = vector.broadcast %cst_3 : f32 to vector<4x32xf32>
    %5 = arith.mulf %3, %4 : vector<4x32xf32>
    %cst_4 = arith.constant 5.000000e-01 : f32
    %cst_5 = arith.constant 5.000000e-01 : f32
    %6 = arith.mulf %cst_4, %cst_5 : f32
    %7 = vector.broadcast %6 : f32 to vector<4x32xf32>
    %8 = arith.addf %5, %7 : vector<4x32xf32>
    %9 = math.floor %8 : vector<4x32xf32>
    %cst_6 = arith.constant 2.000000e+00 : f32
    %10 = vector.broadcast %cst_6 : f32 to vector<4x32xf32>
    %11 = arith.mulf %9, %10 : vector<4x32xf32>
    %12 = arith.subf %3, %11 : vector<4x32xf32>
    %13 = arith.fptosi %12 : vector<4x32xf32> to vector<4x32xi32>
    %c0_7 = arith.constant 0 : index
    %c0_8 = arith.constant 0 : index
    %14 = vector.load %arg2[%c0_7, %c0_8] : memref<4x32xi32, #tpu.memory_space<vmem>>, vector<4x32xi32>
    tpu.vector_store %arg2[%c0_7, %c0_8], %13 {strides = array<i32>} : memref<4x32xi32, #tpu.memory_space<vmem>>, vector<4x32xi32>,
    return
  }
}

</mosaic_0001>

<bundles_post_ra>
// kernel: tpu_custom_call.1
= control target key start
LH: loop header
LB: loop body
LE: loop exit
PB: predicated region body
PF: predicated region fallthrough
CT: control target
= control target key end

     0   :  { %7 = vsyncpa [#allocation3], 0  ;;  %s302_s0 = inlined_call_operand.hbm [shape: s32[4,16], index: 0, kind: input, shape index: {}]   ;;  %s303_s1 = inlined_call_operand.hbm [shape: f32[16,32], index: 1, kind: input, shape index: {}]   ;;  %s304_s2 = inlined_call_operand.hbm [shape: s32[4,32], index: 2, kind: output, shape index: {}]  }
   0x1   :  { %8 = vsyncpa [#allocation6], 0 }
   0x2   :  { %9 = vsyncpa [#allocation4], 0  ;;  %s236_s9 = smov [#allocation2]   ;;  %s237_s11 = smov [#allocation5]  }
   0x3   :  { %s16_s10 = sshll.u32 %s236_s9, 4  ;;  %s25_s12 = sshll.u32 %s237_s11, 4  ;;  %s17_s10 = int_to_ptr.vmem [resolvable:$true] %s16_s10  ;;  %s259_s12 = int_to_ptr.vmem [resolvable:$true] %s25_s12 }
   0x4   :  { %s164_s15 = scalar_lea.hbm %s302_s0, 64 }
   0x5   :  { %p165_p0 = scmp.ne.s32.totalorder %s302_s0, %s164_s15  ;;  %p168_p1 = scmp.lt.u32.totalorder %s164_s15, %s302_s0 }
   0x7   :  { %p170_p2 = pnand %p168_p1, %p165_p0 }
   0x9   :  { %173 = shalt.err (!%p170_p2)
}
   0xa   :  { %s174_s20 = scalar_lea.vmem %s17_s10, 64  ;;  %p179_p4 = scmp.lt.s32.totalorder %s17_s10, %s17_s10 }
   0xb   :  { %p175_p3 = scmp.ne.s32.totalorder %s17_s10, %s174_s20  ;;  %p180_p5 = scmp.lt.s32.totalorder %s174_s20, %s174_s20 }
   0xd   :  { %p181_p6 = por %p180_p5, %p179_p4 }
   0xf   :  { %p182_p7 = pnand %p181_p6, %p175_p3 }
  0x11   :  { %185 = shalt.err (!%p182_p7)
}
  0x12   :  { %19 = dma.hbm_to_vmem [thread:$0]  %s302_s0, 64, %s17_s10, [#allocation3]  }
  0x13   :  { %s186_s25 = scalar_lea.hbm %s303_s1, 256 }
  0x14   :  { %p187_p8 = scmp.ne.s32.totalorder %s303_s1, %s186_s25  ;;  %p190_p9 = scmp.lt.u32.totalorder %s186_s25, %s303_s1 }
  0x16   :  { %p192_p10 = pnand %p190_p9, %p187_p8 }
  0x18   :  { %195 = shalt.err (!%p192_p10)
}
  0x19   :  { %s196_s30 = scalar_lea.vmem %s259_s12, 256  ;;  %p201_p12 = scmp.lt.s32.totalorder %s259_s12, %s259_s12 }
  0x1a   :  { %p197_p11 = scmp.ne.s32.totalorder %s259_s12, %s196_s30  ;;  %p202_p13 = scmp.lt.s32.totalorder %s196_s30, %s196_s30 }
  0x1c   :  { %p203_p0 = por %p202_p13, %p201_p12 }
  0x1e   :  { %p204_p1 = pnand %p203_p0, %p197_p11 }
  0x20   :  { %207 = shalt.err (!%p204_p1)
}
  0x21   :  { %s238_s0 = smov 128   ;;  %s239_s3 = smov 8  }
  0x22   :  { %31 = dma.hbm_to_vmem [thread:$0]  %s303_s1, 256, %s259_s12, [#allocation6], %s238_s0, %s238_s0, %s239_s3  }
  0x23   :  { %230 = dma.done.wait [#allocation3], 64  }
  0x24   :  { %231 = vsyncadd [#allocation3], 4294967232 }
  0x25   :  { %232 = dma.done.wait [#allocation6], 256  }
  0x26   :  { %233 = vsyncadd [#allocation6], 4294967040  ;;  %v240_v0 = vmov 0.0|0.0   ;;  %vm241_vm0 = vmmov 0   ;;  %v242_v1 = vmov 0.0   ;;  %v40_v2 = vld [vmem:[#allocation5] sm:$0xff] }
  0x27   :  { %151 = vmatprep.subr.bf16.mxu0 %v240_v0  ;;  %148 = vmatprep.mubr.msk.f32.mxu0 %vm241_vm0, %v242_v1  ;;  %v41_v3 = vld [vmem:[#allocation5 + $0x8] sm:$0xff]  ;;  %v38_v4 = vld [vmem:[#allocation2] sm:$0xf]  ;;  %vm42_vm1 = vcmask 130048   ;;  %s243_s1 = smov [#allocation7]   ;;  %vm122_vm2 = vcmask 257024  }
  0x28   :  { %v152_v5 = vpack.c.bf16 %v41_v3, %v40_v2  ;;  %v39_v6 = vcvt.s32.f32 %v38_v4  ;;  %s130_s6 = sshll.u32 %s243_s1, 4  ;;  %s131_s6 = int_to_ptr.vmem [resolvable:$true] %s130_s6 }
  0x29   :  { %s208_s7 = scalar_lea.vmem %s131_s6, 64  ;;  %p213_p3 = scmp.lt.s32.totalorder %s131_s6, %s131_s6 }
  0x2a   :  { %153 = vmatpush3.bf16.msra.mxu0 %v152_v5  ;;  %p209_p2 = scmp.ne.s32.totalorder %s131_s6, %s208_s7  ;;  %p214_p4 = scmp.lt.s32.totalorder %s208_s7, %s208_s7 }
  0x2c   :  { %p215_p5 = por %p214_p4, %p213_p3 }
  0x2d   :  { %149 = vmatmul.mubr.msk.f32.vlgmr.msra.gmra.mrb[0].mxu0 %vm42_vm1, %v39_v6 }
  0x2e   :  { %p216_p6 = pnand %p215_p5, %p209_p2 }
 0x100   :  { %v112_v7 = vpop.f32.mrb[0].mxu0 }
 0x101   :  { %v116_v8 = vmul.f32 0.5, %v112_v7  ;;  %v150_v9 = vpop.f32.mrb[1].mxu0 }
 0x103   :  { %v117_v10 = vadd.f32 0.25, %v116_v8 }
 0x105   :  { %v118_v11 = vfloor.f32 %v117_v10 }
 0x107   :  { %v119_v12 = vmul.f32 2.0, %v118_v11 }
 0x109   :  { %v120_v13 = vsub.f32 %v112_v7, %v119_v12 }
 0x10b   :  { %v154_v14 = vtrunc.f32 %v120_v13 }
 0x10d   :  { %v155_v15 = vcvt.f32.s32 %v154_v14 }
 0x10f   :  { %123 = vst.msk [vmem:[#allocation7] sm:$0xf] %vm122_vm2, %v155_v15 }
 0x110   :  { %219 = shalt.err (!%p216_p6)
}
 0x111   :  { %s220_s10 = scalar_lea.hbm %s304_s2, 64 }
 0x112   :  { %p221_p7 = scmp.ne.s32.totalorder %s304_s2, %s220_s10  ;;  %p224_p8 = scmp.lt.u32.totalorder %s220_s10, %s304_s2 }
 0x114   :  { %p226_p9 = pnand %p224_p8, %p221_p7 }
 0x116   :  { %229 = shalt.err (!%p226_p9)
}
 0x117   :  { %133 = dma.vmem_to_hbm [thread:$0]  %s131_s6, 64, %s304_s2, [#allocation4]  }
 0x118   :  { %234 = dma.done.wait [#allocation4], 64  }
 0x119   :  { %235 = vsyncadd [#allocation4], 4294967232 }
 0x11a   :  { %137 = vsyncpa [#allocation3], 1 }
 0x11b   :  { %138 = vsyncpa [#allocation6], 1 }
 0x11c   :  { %139 = vsyncpa [#allocation4], 1 }

</bundles_post_ra>
